<compile_context>
chip_gen: v6e
topology: v6e:2x2x1
jax: 0.10.0
libtpu: 0.0.40
codegen_flags: <defaults>
</compile_context>

<pallas_src>
import functools

import jax
import jax.numpy as jnp
from jax.experimental import pallas as pl
from jax.experimental.pallas import tpu as pltpu

NEG_SLOPE = 0.01  # PyTorch nn.LeakyReLU() default
COMPUTE_DTYPE = jnp.bfloat16  # MXU-native input dtype; accumulation stays f32


def _leaky_relu(x):
    # max(x, a*x) == LeakyReLU(x) for 0 < a < 1 (2 VALU ops vs cmp+select's 3).
    return jnp.maximum(x, NEG_SLOPE * x)


def _round_up(x, m):
    return (x + m - 1) // m * m


def mlp_kernel(x_ref, w1_ref, b1_ref, w2_ref, b2_ref, w3_ref, b3_ref, o_ref):
    x = x_ref[...]                                                     # bf16 [bb, in_p]
    h = jnp.dot(x, w1_ref[...], preferred_element_type=jnp.float32)    # f32 acc on MXU
    h = _leaky_relu(h + b1_ref[...])
    h = jnp.dot(h.astype(w2_ref.dtype), w2_ref[...],
                preferred_element_type=jnp.float32)
    h = _leaky_relu(h + b2_ref[...])
    o = jnp.dot(h.astype(w3_ref.dtype), w3_ref[...],
                preferred_element_type=jnp.float32)
    o_ref[...] = (o + b3_ref[...]).astype(o_ref.dtype)                 # lane-dense store


@functools.partial(jax.jit, static_argnames=("block_b",))
def network_forward(x, params, *, block_b=512):
    """x: [B, in_features] float32.  params: dict of w1,b1,w2,b2,w3,b3 (f32)."""
    B, in_f = x.shape
    mid_f = params["w1"].shape[1]
    n_class = params["w3"].shape[1]

    # Pad feature dims to full 128-lane multiples (unmasked loads/stores, full MXU width).
    in_p = _round_up(in_f, 128)
    mid_p = _round_up(mid_f, 128)
    nc_p = _round_up(n_class, 128)

    # Batch tile: as large as possible (up to block_b), multiple of 8 sublanes.
    bb = min(block_b, _round_up(B, 8))
    B_p = _round_up(B, bb)

    # Host/wrapper-side casts + zero padding (exact for the matmul chain).
    xp = jnp.pad(x.astype(COMPUTE_DTYPE), ((0, B_p - B), (0, in_p - in_f)))
    w1 = jnp.pad(params["w1"].astype(COMPUTE_DTYPE), ((0, in_p - in_f), (0, mid_p - mid_f)))
    w2 = jnp.pad(params["w2"].astype(COMPUTE_DTYPE), ((0, mid_p - mid_f), (0, mid_p - mid_f)))
    w3 = jnp.pad(params["w3"].astype(COMPUTE_DTYPE), ((0, mid_p - mid_f), (0, nc_p - n_class)))
    b1 = jnp.pad(params["b1"].astype(jnp.float32), ((0, 0), (0, mid_p - mid_f)))
    b2 = jnp.pad(params["b2"].astype(jnp.float32), ((0, 0), (0, mid_p - mid_f)))
    b3 = jnp.pad(params["b3"].astype(jnp.float32), ((0, 0), (0, nc_p - n_class)))

    grid = (B_p // bb,)

    def bcast(i):  # grid-invariant block (weights / biases)
        return (0, 0)

    flops = 2 * B_p * (in_p * mid_p + mid_p * mid_p + mid_p * nc_p)
    bytes_accessed = (
        xp.size * xp.dtype.itemsize
        + sum(a.size * a.dtype.itemsize for a in (w1, w2, w3, b1, b2, b3))
        + B_p * nc_p * 4
    )

    out_p = pl.pallas_call(
        mlp_kernel,
        out_shape=jax.ShapeDtypeStruct((B_p, nc_p), jnp.float32),
        grid_spec=pl.GridSpec(
            grid=grid,
            in_specs=[
                pl.BlockSpec((bb, in_p), lambda i: (i, 0)),   # x tile (batch-tiled)
                pl.BlockSpec((in_p, mid_p), bcast),           # w1
                pl.BlockSpec((1, mid_p), bcast),              # b1
                pl.BlockSpec((mid_p, mid_p), bcast),          # w2
                pl.BlockSpec((1, mid_p), bcast),              # b2
                pl.BlockSpec((mid_p, nc_p), bcast),           # w3
                pl.BlockSpec((1, nc_p), bcast),               # b3
            ],
            out_specs=pl.BlockSpec((bb, nc_p), lambda i: (i, 0)),
        ),
        compiler_params=pltpu.CompilerParams(
            dimension_semantics=("parallel",),  # batch axis shards across TCs on v7x
        ),
        cost_estimate=pl.CostEstimate(
            flops=flops, transcendentals=0, bytes_accessed=bytes_accessed
        ),
    )(xp, w1, b1, w2, b2, w3, b3)

    # Slice away batch / class padding.
    return out_p[:B, :n_class]


def init_params(key, in_features, mid_features, n_class):
    """Deterministic init mimicking nn.Linear's U(-1/sqrt(fan_in), 1/sqrt(fan_in)).

    Weights stored as [fan_in, fan_out] (PyTorch weight.T); biases as (1, fan_out)."""
    keys = jax.random.split(key, 6)

    def linear(kw, kb, fan_in, fan_out):
        bound = 1.0 / jnp.sqrt(fan_in)
        w = jax.random.uniform(kw, (fan_in, fan_out), jnp.float32, -bound, bound)
        b = jax.random.uniform(kb, (1, fan_out), jnp.float32, -bound, bound)
        return w, b

    w1, b1 = linear(keys[0], keys[1], in_features, mid_features)
    w2, b2 = linear(keys[2], keys[3], mid_features, mid_features)
    w3, b3 = linear(keys[4], keys[5], mid_features, n_class)
    return {"w1": w1, "b1": b1, "w2": w2, "b2": b2, "w3": w3, "b3": b3}


def reference_forward(x, params):
    """JAX reference that mirrors the kernel's bf16-input / f32-accumulate numerics."""
    def q(a):  # quantize to bf16 like the kernel's MXU inputs, compute in f32
        return a.astype(COMPUTE_DTYPE).astype(jnp.float32)

    h = q(x) @ q(params["w1"]) + params["b1"]
    h = jnp.maximum(h, NEG_SLOPE * h)
    h = q(h) @ q(params["w2"]) + params["b2"]
    h = jnp.maximum(h, NEG_SLOPE * h)
    return q(h) @ q(params["w3"]) + params["b3"]


if __name__ == "__main__":
    key = jax.random.PRNGKey(0)
    k_x, k_p = jax.random.split(key)

    B, in_features, mid_features, n_class = 8, 32, 32, 8
    x = jax.random.normal(k_x, (B, in_features), jnp.float32)
    params = init_params(k_p, in_features, mid_features, n_class)

    out = network_forward(x, params)
    out = jax.block_until_ready(out)

    ref = reference_forward(x, params)
    assert out.shape == (B, n_class), out.shape
    assert jnp.allclose(out, ref, atol=1e-3, rtol=1e-3), "mismatch vs JAX reference"

    print("KERNEL_OK")
</pallas_src>

<mosaic_0001>
module attributes {stable_mosaic.version = 11 : i64} {
  func.func @mlp_kernel(%arg0: i32, %arg1: memref<8x128xbf16, #tpu.memory_space<vmem>>, %arg2: memref<128x128xbf16, #tpu.memory_space<vmem>>, %arg3: memref<1x128xf32, #tpu.memory_space<vmem>>, %arg4: memref<128x128xbf16, #tpu.memory_space<vmem>>, %arg5: memref<1x128xf32, #tpu.memory_space<vmem>>, %arg6: memref<128x128xbf16, #tpu.memory_space<vmem>>, %arg7: memref<1x128xf32, #tpu.memory_space<vmem>>, %arg8: memref<8x128xf32, #tpu.memory_space<vmem>>) attributes {dimension_semantics = [#tpu.dimension_semantics<parallel>], iteration_bounds = array<i64: 1>, scalar_prefetch = 0 : i64, scratch_operands = 0 : i64, tpu.core_type = #tpu.core_type<tc>, window_params = [{transform_indices = @transform_0, window_bounds = array<i64: 8, 128>}, {pipeline_mode = #tpu.pipeline_mode<synchronous>, transform_indices = @transform_1, window_bounds = array<i64: 128, 128>}, {pipeline_mode = #tpu.pipeline_mode<synchronous>, transform_indices = @transform_2, window_bounds = array<i64: 1, 128>}, {pipeline_mode = #tpu.pipeline_mode<synchronous>, transform_indices = @transform_3, window_bounds = array<i64: 128, 128>}, {pipeline_mode = #tpu.pipeline_mode<synchronous>, transform_indices = @transform_4, window_bounds = array<i64: 1, 128>}, {pipeline_mode = #tpu.pipeline_mode<synchronous>, transform_indices = @transform_5, window_bounds = array<i64: 128, 128>}, {pipeline_mode = #tpu.pipeline_mode<synchronous>, transform_indices = @transform_6, window_bounds = array<i64: 1, 128>}, {transform_indices = @transform_7, window_bounds = array<i64: 8, 128>}]} {
    %c0 = arith.constant 0 : index
    %c0_0 = arith.constant 0 : index
    %0 = vector.load %arg1[%c0, %c0_0] : memref<8x128xbf16, #tpu.memory_space<vmem>>, vector<8x128xbf16>
    %c0_1 = arith.constant 0 : index
    %c0_2 = arith.constant 0 : index
    %1 = vector.load %arg2[%c0_1, %c0_2] : memref<128x128xbf16, #tpu.memory_space<vmem>>, vector<128x128xbf16>
    %cst = arith.constant dense<0.000000e+00> : vector<8x128xf32>
    %2 = tpu.matmul %0, %1, %cst {dimension_numbers = #tpu.dot_dimension_numbers<[1], [0], [0], [1], [0, 0, 1, 1], [], []>} : vector<8x128xbf16>, vector<128x128xbf16>, vector<8x128xf32> -> vector<8x128xf32>
    %c0_3 = arith.constant 0 : index
    %c0_4 = arith.constant 0 : index
    %3 = vector.load %arg3[%c0_3, %c0_4] : memref<1x128xf32, #tpu.memory_space<vmem>>, vector<1x128xf32>
    %4 = vector.broadcast %3 : vector<1x128xf32> to vector<8x128xf32>
    %5 = arith.addf %2, %4 : vector<8x128xf32>
    %cst_5 = arith.constant 0.00999999977 : f32
    %6 = vector.broadcast %cst_5 : f32 to vector<8x128xf32>
    %7 = arith.mulf %6, %5 : vector<8x128xf32>
    %8 = arith.maximumf %5, %7 : vector<8x128xf32>
    %9 = arith.truncf %8 : vector<8x128xf32> to vector<8x128xbf16>
    %c0_6 = arith.constant 0 : index
    %c0_7 = arith.constant 0 : index
    %10 = vector.load %arg4[%c0_6, %c0_7] : memref<128x128xbf16, #tpu.memory_space<vmem>>, vector<128x128xbf16>
    %cst_8 = arith.constant dense<0.000000e+00> : vector<8x128xf32>
    %11 = tpu.matmul %9, %10, %cst_8 {dimension_numbers = #tpu.dot_dimension_numbers<[1], [0], [0], [1], [0, 0, 1, 1], [], []>} : vector<8x128xbf16>, vector<128x128xbf16>, vector<8x128xf32> -> vector<8x128xf32>
    %c0_9 = arith.constant 0 : index
    %c0_10 = arith.constant 0 : index
    %12 = vector.load %arg5[%c0_9, %c0_10] : memref<1x128xf32, #tpu.memory_space<vmem>>, vector<1x128xf32>
    %13 = vector.broadcast %12 : vector<1x128xf32> to vector<8x128xf32>
    %14 = arith.addf %11, %13 : vector<8x128xf32>
    %cst_11 = arith.constant 0.00999999977 : f32
    %15 = vector.broadcast %cst_11 : f32 to vector<8x128xf32>
    %16 = arith.mulf %15, %14 : vector<8x128xf32>
    %17 = arith.maximumf %14, %16 : vector<8x128xf32>
    %18 = arith.truncf %17 : vector<8x128xf32> to vector<8x128xbf16>
    %c0_12 = arith.constant 0 : index
    %c0_13 = arith.constant 0 : index
    %19 = vector.load %arg6[%c0_12, %c0_13] : memref<128x128xbf16, #tpu.memory_space<vmem>>, vector<128x128xbf16>
    %cst_14 = arith.constant dense<0.000000e+00> : vector<8x128xf32>
    %20 = tpu.matmul %18, %19, %cst_14 {dimension_numbers = #tpu.dot_dimension_numbers<[1], [0], [0], [1], [0, 0, 1, 1], [], []>} : vector<8x128xbf16>, vector<128x128xbf16>, vector<8x128xf32> -> vector<8x128xf32>
    %c0_15 = arith.constant 0 : index
    %c0_16 = arith.constant 0 : index
    %21 = vector.load %arg7[%c0_15, %c0_16] : memref<1x128xf32, #tpu.memory_space<vmem>>, vector<1x128xf32>
    %22 = vector.broadcast %21 : vector<1x128xf32> to vector<8x128xf32>
    %23 = arith.addf %20, %22 : vector<8x128xf32>
    %c0_17 = arith.constant 0 : index
    %c0_18 = arith.constant 0 : index
    %24 = vector.load %arg8[%c0_17, %c0_18] : memref<8x128xf32, #tpu.memory_space<vmem>>, vector<8x128xf32>
    tpu.vector_store %arg8[%c0_17, %c0_18], %23 {strides = array<i32>} : memref<8x128xf32, #tpu.memory_space<vmem>>, vector<8x128xf32>,
    return
  }
  func.func @transform_0(%arg0: i32) -> (i32, i32) {
    %c0_i32 = arith.constant 0 : i32
    %c0_i32_0 = arith.constant 0 : i32
    return %arg0, %c0_i32 : i32, i32
  }
  func.func @transform_1(%arg0: i32) -> (i32, i32) {
    %c0_i32 = arith.constant 0 : i32
    %c0_i32_0 = arith.constant 0 : i32
    %c0_i32_1 = arith.constant 0 : i32
    return %c0_i32, %c0_i32_0 : i32, i32
  }
  func.func @transform_2(%arg0: i32) -> (i32, i32) {
    %c0_i32 = arith.constant 0 : i32
    %c0_i32_0 = arith.constant 0 : i32
    %c0_i32_1 = arith.constant 0 : i32
    return %c0_i32, %c0_i32_0 : i32, i32
  }
  func.func @transform_3(%arg0: i32) -> (i32, i32) {
    %c0_i32 = arith.constant 0 : i32
    %c0_i32_0 = arith.constant 0 : i32
    %c0_i32_1 = arith.constant 0 : i32
    return %c0_i32, %c0_i32_0 : i32, i32
  }
  func.func @transform_4(%arg0: i32) -> (i32, i32) {
    %c0_i32 = arith.constant 0 : i32
    %c0_i32_0 = arith.constant 0 : i32
    %c0_i32_1 = arith.constant 0 : i32
    return %c0_i32, %c0_i32_0 : i32, i32
  }
  func.func @transform_5(%arg0: i32) -> (i32, i32) {
    %c0_i32 = arith.constant 0 : i32
    %c0_i32_0 = arith.constant 0 : i32
    %c0_i32_1 = arith.constant 0 : i32
    return %c0_i32, %c0_i32_0 : i32, i32
  }
  func.func @transform_6(%arg0: i32) -> (i32, i32) {
    %c0_i32 = arith.constant 0 : i32
    %c0_i32_0 = arith.constant 0 : i32
    %c0_i32_1 = arith.constant 0 : i32
    return %c0_i32, %c0_i32_0 : i32, i32
  }
  func.func @transform_7(%arg0: i32) -> (i32, i32) {
    %c0_i32 = arith.constant 0 : i32
    %c0_i32_0 = arith.constant 0 : i32
    return %arg0, %c0_i32 : i32, i32
  }
}

</mosaic_0001>

<bundles_post_ra>
// kernel: network_forward.1
= control target key start
LH: loop header
LB: loop body
LE: loop exit
PB: predicated region body
PF: predicated region fallthrough
CT: control target
= control target key end

     0   :  { %v546_v1 = vmov 0.0   ;;  %vm547_vm0 = vmmov 0   ;;  %s706_s0 = inlined_call_operand.vmem [shape: bf16[8,128], index: 0, kind: input, shape index: {}]   ;;  %s707_s1 = inlined_call_operand.vmem [shape: bf16[128,128], index: 1, kind: input, shape index: {}]   ;;  %s708_s2 = inlined_call_operand.vmem [shape: f32[1,128], index: 2, kind: input, shape index: {}]   ;;  %s709_s3 = inlined_call_operand.vmem [shape: bf16[128,128], index: 3, kind: input, shape index: {}]   ;;  %s710_s4 = inlined_call_operand.vmem [shape: f32[1,128], index: 4, kind: input, shape index: {}]   ;;  %s711_s5 = inlined_call_operand.vmem [shape: bf16[128,128], index: 5, kind: input, shape index: {}]   ;;  %s712_s6 = inlined_call_operand.vmem [shape: f32[1,128], index: 6, kind: input, shape index: {}]   ;;  %s713_s7 = inlined_call_operand.hbm [shape: f32[8,128], index: 7, kind: output, shape index: {}]  }
   0x1   :  { %v500_v0 = vld [vmem:[%s707_s1 + $0x38] sm:$0xff]   ;;  %437 = vmatprep.subr.bf16.mxu0 %v546_v1  ;;  %457 = vmatprep.subr.bf16.mxu1 %v546_v1  ;;  %v501_v2 = vld [vmem:[%s707_s1 + $0x30] sm:$0xff]   ;;  %v502_v3 = vld [vmem:[%s707_s1 + $0x28] sm:$0xff]  }
   0x2   :  { %438 = vmatpush3.bf16.msra.mxu0 %v500_v0  ;;  %453 = vmatprep.mubr.msk.bf16.mxu0 %vm547_vm0, %v546_v1  ;;  %v508_v4 = vld [vmem:[%s709_s3 + $0x38] sm:$0xff]   ;;  %v503_v5 = vld [vmem:[%s707_s1 + $0x20] sm:$0xff]   ;;  %v509_v6 = vld [vmem:[%s709_s3 + $0x30] sm:$0xff]  }
   0x3   :  { %439 = vmatprep.subr.bf16.mxu0 %v546_v1  ;;  %473 = vmatprep.mubr.msk.bf16.mxu1 %vm547_vm0, %v546_v1  ;;  %v504_v7 = vld [vmem:[%s707_s1 + $0x18] sm:$0xff]   ;;  %v510_v8 = vld [vmem:[%s709_s3 + $0x28] sm:$0xff]   ;;  %v505_v9 = vld [vmem:[%s707_s1 + $0x10] sm:$0xff]  }
   0x4   :  { %458 = vmatpush3.bf16.msra.mxu1 %v508_v4  ;;  %v511_v10 = vld [vmem:[%s709_s3 + $0x20] sm:$0xff]  }
   0x5   :  { %459 = vmatprep.subr.bf16.mxu1 %v546_v1 }
   0x6   :  { %440 = vmatpush3.bf16.msra.mxu0 %v501_v2 }
   0x7   :  { %441 = vmatprep.subr.bf16.mxu0 %v546_v1 }
   0x8   :  { %460 = vmatpush3.bf16.msra.mxu1 %v509_v6 }
   0x9   :  { %461 = vmatprep.subr.bf16.mxu1 %v546_v1 }
   0xa   :  { %442 = vmatpush3.bf16.msra.mxu0 %v502_v3 }
   0xb   :  { %443 = vmatprep.subr.bf16.mxu0 %v546_v1 }
   0xc   :  { %462 = vmatpush3.bf16.msra.mxu1 %v510_v8 }
   0xd   :  { %463 = vmatprep.subr.bf16.mxu1 %v546_v1 }
   0xe   :  { %444 = vmatpush3.bf16.msra.mxu0 %v503_v5 }
   0xf   :  { %445 = vmatprep.subr.bf16.mxu0 %v546_v1 }
  0x12   :  { %446 = vmatpush3.bf16.msra.mxu0 %v504_v7 }
  0x13   :  { %447 = vmatprep.subr.bf16.mxu0 %v546_v1 }
  0x14   :  { %12 = vsyncpa [#allocation3], 0  ;;  %v506_v11 = vld [vmem:[%s707_s1 + $0x8] sm:$0xff]   ;;  %464 = vmatpush3.bf16.msra.mxu1 %v511_v10  ;;  %v512_v12 = vld [vmem:[%s709_s3 + $0x18] sm:$0xff]   ;;  %s548_s30 = smov [#allocation2]  }
  0x15   :  { %465 = vmatprep.subr.bf16.mxu1 %v546_v1  ;;  %v507_v13 = vld [vmem:[%s707_s1] sm:$0xff]   ;;  %v513_v14 = vld [vmem:[%s709_s3 + $0x10] sm:$0xff]   ;;  %v514_v16 = vld [vmem:[%s709_s3 + $0x8] sm:$0xff]  }
  0x16   :  { %448 = vmatpush3.bf16.msra.mxu0 %v505_v9  ;;  %v28_v15 = vld [vmem:[%s706_s0] sm:$0xf]  ;;  %v516_v18 = vld [vmem:[%s711_s5 + $0x38] sm:$0xff]   ;;  %v517_v19 = vld [vmem:[%s711_s5 + $0x30] sm:$0xff]  }
  0x17   :  { %449 = vmatprep.subr.bf16.mxu0 %v546_v1  ;;  %v515_v17 = vld [vmem:[%s709_s3] sm:$0xff]   ;;  %v518_v20 = vld [vmem:[%s711_s5 + $0x28] sm:$0xff]   ;;  %v520_v22 = vld [vmem:[%s711_s5 + $0x18] sm:$0xff]  }
  0x18   :  { %466 = vmatpush3.bf16.msra.mxu1 %v512_v12  ;;  %v519_v21 = vld [vmem:[%s711_s5 + $0x20] sm:$0xff]   ;;  %v521_v23 = vld [vmem:[%s711_s5 + $0x10] sm:$0xff]   ;;  %v522_v33 = vld [vmem:[%s711_s5 + $0x8] sm:$0xff]  }
  0x19   :  { %467 = vmatprep.subr.bf16.mxu1 %v546_v1  ;;  %v383_v24 = vld [vmem:[%s708_s2] ss:$0 sm:$0xff] }
  0x1a   :  { %450 = vmatpush3.bf16.msra.mxu0 %v506_v11  ;;  %v523_v34 = vld [vmem:[%s711_s5] sm:$0xff]   ;;  %s375_s5 = sshll.u32 %s548_s30, 4  ;;  %s376_s5 = int_to_ptr.vmem [resolvable:$true] %s375_s5 }
  0x1b   :  { %451 = vmatprep.subr.bf16.mxu0 %v546_v1  ;;  %v392_v35 = vld [vmem:[%s710_s4] ss:$0 sm:$0xff]  ;;  %s524_s4 = scalar_lea.vmem %s376_s5, 128  ;;  %p529_p1 = scmp.lt.s32.totalorder %s376_s5, %s376_s5 }
  0x1c   :  { %468 = vmatpush3.bf16.msra.mxu1 %v513_v14  ;;  %v401_v44 = vld [vmem:[%s712_s6] ss:$0 sm:$0xff]  ;;  %p525_p0 = scmp.ne.s32.totalorder %s376_s5, %s524_s4  ;;  %p530_p2 = scmp.lt.s32.totalorder %s524_s4, %s524_s4 }
  0x1d   :  { %469 = vmatprep.subr.bf16.mxu1 %v546_v1 }
  0x1e   :  { %452 = vmatpush3.bf16.msra.mxu0 %v507_v13  ;;  %p531_p3 = por %p530_p2, %p529_p1 }
  0x1f   :  { %477 = vmatprep.subr.bf16.mxu0 %v546_v1 }
  0x20   :  { %470 = vmatpush3.bf16.msra.mxu1 %v514_v16  ;;  %p532_p4 = pnand %p531_p3, %p525_p0 }
  0x21   :  { %454 = vmatmul.mubr.bf16.vlgmr.msra.gmra.mxu0 %v28_v15  ;;  %471 = vmatprep.subr.bf16.mxu1 %v546_v1 }
  0x22   :  { %493 = vmatprep.mubr.msk.bf16.mxu0 %vm547_vm0, %v546_v1  ;;  %478 = vmatpush3.bf16.msra.mxu0 %v516_v18 }
  0x23   :  { %479 = vmatprep.subr.bf16.mxu0 %v546_v1 }
  0x24   :  { %472 = vmatpush3.bf16.msra.mxu1 %v515_v17 }
  0x26   :  { %480 = vmatpush3.bf16.msra.mxu0 %v517_v19 }
  0x27   :  { %481 = vmatprep.subr.bf16.mxu0 %v546_v1 }
  0x2a   :  { %482 = vmatpush3.bf16.msra.mxu0 %v518_v20 }
  0x2b   :  { %483 = vmatprep.subr.bf16.mxu0 %v546_v1 }
  0x2e   :  { %484 = vmatpush3.bf16.msra.mxu0 %v519_v21 }
  0x2f   :  { %485 = vmatprep.subr.bf16.mxu0 %v546_v1 }
  0x32   :  { %486 = vmatpush3.bf16.msra.mxu0 %v520_v22 }
  0x33   :  { %487 = vmatprep.subr.bf16.mxu0 %v546_v1 }
  0x36   :  { %488 = vmatpush3.bf16.msra.mxu0 %v521_v23 }
  0x37   :  { %489 = vmatprep.subr.bf16.mxu0 %v546_v1 }
  0x3a   :  { %490 = vmatpush3.bf16.msra.mxu0 %v522_v33 }
  0x3b   :  { %491 = vmatprep.subr.bf16.mxu0 %v546_v1 }
  0x3e   :  { %492 = vmatpush3.bf16.msra.mxu0 %v523_v34 }
  0xe1   :  { %v134_v25 = vpop.f32.mrf.mxu0 }
  0xe2   :  { %v135_v26 = vadd.f32 %v383_v24, %v134_v25 }
  0xe3   :  { %v455_v27 = vpop.f32.mrf.mxu0 }
  0xe4   :  { %v140_v28 = vmul.f32 0.01, %v135_v26 }
  0xe5   :  { %v137_v29 = vpop.f32.mrf.mxu0 }
  0xe6   :  { %v141_v30 = vmax.f32 %v135_v26, %v140_v28 }
  0xe7   :  { %v456_v31 = vpop.f32.mrf.mxu0 }
  0xe8   :  { %v142_v32 = vpack.c.bf16 %v141_v30, %v141_v30 }
  0xea   :  { %474 = vmatmul.mubr.bf16.vlgmr.msra.gmra.mxu1 %v142_v32 }
 0x1aa   :  { %v248_v36 = vpop.f32.mrf.mxu1 }
 0x1ab   :  { %v249_v37 = vadd.f32 %v392_v35, %v248_v36 }
 0x1ac   :  { %v475_v38 = vpop.f32.mrf.mxu1 }
 0x1ad   :  { %v254_v39 = vmul.f32 0.01, %v249_v37 }
 0x1ae   :  { %v251_v40 = vpop.f32.mrf.mxu1 }
 0x1af   :  { %v255_v41 = vmax.f32 %v249_v37, %v254_v39 }
 0x1b0   :  { %v476_v42 = vpop.f32.mrf.mxu1 }
 0x1b1   :  { %v256_v43 = vpack.c.bf16 %v255_v41, %v255_v41 }
 0x1b3   :  { %494 = vmatmul.mubr.bf16.vlgmr.msra.gmra.mxu0 %v256_v43 }
 0x273   :  { %v362_v45 = vpop.f32.mrf.mxu0 }
 0x274   :  { %v363_v46 = vadd.f32 %v401_v44, %v362_v45 }
 0x275   :  { %v495_v47 = vpop.f32.mrf.mxu0 }
 0x276   :  { %368 = vst [vmem:[#allocation2] sm:$0xff] %v363_v46 }
 0x277   :  { %v365_v48 = vpop.f32.mrf.mxu0 }
 0x278   :  { %535 = shalt.err (!%p532_p4)
}
 0x279   :  { %378 = dma.vmem_to_hbm [thread:$0]  %s376_s5, 128, %s713_s7, [#allocation3]   ;;  %v496_v49 = vpop.f32.mrf.mxu0 }
 0x27a   :  { %544 = dma.done.wait [#allocation3], 128  }
 0x27b   :  { %545 = vsyncadd [#allocation3], 4294967168 }
 0x27c   :  { %382 = vsyncpa [#allocation3], 1 }

</bundles_post_ra>
